<compile_context>
chip_gen: v5e
topology: v5e:2x2
jax: 0.10.0
libtpu: 0.0.40
codegen_flags: <defaults>
</compile_context>

<pallas_src>
import functools

import jax
import jax.numpy as jnp
from jax.experimental import pallas as pl
from jax.experimental.pallas import tpu as pltpu


def _squeeze_block_kernel(x_ref, w1_ref, b1_ref, w2_ref, b2_ref, o_ref, *, hw_true):
    # x_ref / o_ref: (1, C, HW_pad) in the model dtype.
    # Spatial mean: sum over (possibly zero-padded) lanes / true H*W, in f32.
    s = jnp.sum(x_ref[...].astype(jnp.float32), axis=-1) * (1.0 / hw_true)  # (1, C)

    # Linear(C -> C//divide) + ReLU   (tiny MXU matmuls, f32 accumulate)
    h = jnp.dot(s, w1_ref[...], preferred_element_type=jnp.float32) + b1_ref[...]
    h = jnp.maximum(h, 0.0)

    # Linear(C//divide -> C)
    g = jnp.dot(h, w2_ref[...], preferred_element_type=jnp.float32) + b2_ref[...]

    # hard_sigmoid (module definition): clamp(0.2*x + 0.5, 0, 1)
    scale = jnp.clip(0.2 * g + 0.5, 0.0, 1.0)  # (1, C) f32

    # out = scale.view(1, C, 1) * x  — re-load x from VMEM (fresh vld, no long
    # live range), multiply in f32 (v5e has no bf16 VPU), store in out dtype.
    o_ref[...] = (scale[:, :, None] * x_ref[...].astype(jnp.float32)).astype(o_ref.dtype)


def squeeze_block(x_nchw, w1, b1, w2, b2):
    """x_nchw: (B, C, H, W); w1: (C, Cr); b1: (Cr,); w2: (Cr, C); b2: (C,)."""
    B, C, H, W = x_nchw.shape
    Cr = w1.shape[1]
    HW = H * W

    x = x_nchw.reshape(B, C, HW)
    itemsize = jnp.dtype(x.dtype).itemsize

    # Lane-dense padding: multiple of 128 lanes and >= 512 B per row.
    lane_min = max(128, -(-512 // itemsize))          # 128 for f32, 256 for bf16
    HW_pad = -(-HW // lane_min) * lane_min
    if HW_pad != HW:
        x = jnp.pad(x, ((0, 0), (0, 0), (0, HW_pad - HW)))

    # Tiny MLP params in f32.
    w1f = w1.astype(jnp.float32)
    w2f = w2.astype(jnp.float32)
    b1_2d = b1.reshape(1, Cr).astype(jnp.float32)
    b2_2d = b2.reshape(1, C).astype(jnp.float32)

    # VMEM budget: double-buffered x + out blocks (+ small slack for weights).
    block_bytes = C * HW_pad * itemsize
    vmem_limit = int(min(100 << 20, max(32 << 20, 6 * block_bytes + (2 << 20))))
    # TODO(synk): if C*H*W per batch element ever exceeds ~8-12 MiB, switch to a
    # two-pass (reduce, then scale) spatial tiling instead of one resident block.

    kernel = functools.partial(_squeeze_block_kernel, hw_true=float(HW))

    out = pl.pallas_call(
        kernel,
        out_shape=jax.ShapeDtypeStruct((B, C, HW_pad), x.dtype),
        grid=(B,),
        in_specs=[
            pl.BlockSpec((1, C, HW_pad), lambda b: (b, 0, 0)),
            pl.BlockSpec((C, Cr), lambda b: (0, 0)),   # resident across grid steps
            pl.BlockSpec((1, Cr), lambda b: (0, 0)),
            pl.BlockSpec((Cr, C), lambda b: (0, 0)),
            pl.BlockSpec((1, C), lambda b: (0, 0)),
        ],
        out_specs=pl.BlockSpec((1, C, HW_pad), lambda b: (b, 0, 0)),
        compiler_params=pltpu.CompilerParams(
            dimension_semantics=("parallel",),
            vmem_limit_bytes=vmem_limit,
        ),
    )(x, w1f, b1_2d, w2f, b2_2d)

    if HW_pad != HW:
        out = out[:, :, :HW]
    return out.reshape(B, C, H, W)


def _init_params(key, exp_size, divide=4):
    """Deterministic init mimicking nn.Linear default (U(-1/sqrt(fan_in), +))."""
    hid = exp_size // divide
    k1, k2, k3, k4 = jax.random.split(key, 4)
    lim1 = 1.0 / jnp.sqrt(jnp.float32(exp_size))
    lim2 = 1.0 / jnp.sqrt(jnp.float32(hid))
    # Stored already transposed for y = x @ W + b  (PyTorch stores (out, in)).
    w1 = jax.random.uniform(k1, (exp_size, hid), jnp.float32, -lim1, lim1)
    b1 = jax.random.uniform(k2, (hid,), jnp.float32, -lim1, lim1)
    w2 = jax.random.uniform(k3, (hid, exp_size), jnp.float32, -lim2, lim2)
    b2 = jax.random.uniform(k4, (exp_size,), jnp.float32, -lim2, lim2)
    return w1, b1, w2, b2


def _reference(x, w1, b1, w2, b2):
    """Pure-JAX reference of the PyTorch forward."""
    xf = x.astype(jnp.float32)
    s = jnp.mean(xf, axis=(2, 3))                    # avg_pool2d + view
    h = jnp.maximum(s @ w1 + b1, 0.0)                # Linear + ReLU
    g = h @ w2 + b2                                  # Linear
    scale = jnp.clip(0.2 * g + 0.5, 0.0, 1.0)        # hard_sigmoid (module def)
    return (scale[:, :, None, None] * xf).astype(x.dtype)


if __name__ == "__main__":
    key = jax.random.PRNGKey(0)
    kx, kp = jax.random.split(key)

    B, C, H, W = 2, 32, 16, 16          # exp_size = C = 32, divide = 4
    x = jax.random.normal(kx, (B, C, H, W), jnp.float32)
    w1, b1, w2, b2 = _init_params(kp, C, divide=4)

    out = squeeze_block(x, w1, b1, w2, b2)
    out = jax.block_until_ready(out)

    ref = _reference(x, w1, b1, w2, b2)
    assert out.shape == (B, C, H, W)
    assert out.dtype == x.dtype
    assert jnp.allclose(out, ref, atol=1e-5, rtol=1e-5), "mismatch vs reference"

    # Also exercise a non-128-multiple spatial size (lane padding path) and bf16.
    Hb, Wb = 7, 7
    xb = jax.random.normal(kx, (B, C, Hb, Wb), jnp.float32).astype(jnp.bfloat16)
    outb = jax.block_until_ready(squeeze_block(xb, w1, b1, w2, b2))
    refb = _reference(xb, w1, b1, w2, b2)
    assert outb.shape == (B, C, Hb, Wb)
    assert outb.dtype == jnp.bfloat16
    assert jnp.allclose(outb.astype(jnp.float32), refb.astype(jnp.float32),
                        atol=2e-2, rtol=2e-2), "bf16 mismatch vs reference"

    print("KERNEL_OK")
</pallas_src>

<mosaic_0001>
module attributes {stable_mosaic.version = 11 : i64} {
  func.func @_squeeze_block_kernel(%arg0: i32, %arg1: memref<1x32x256xf32, #tpu.memory_space<vmem>>, %arg2: memref<32x8xf32, #tpu.memory_space<vmem>>, %arg3: memref<1x8xf32, #tpu.memory_space<vmem>>, %arg4: memref<8x32xf32, #tpu.memory_space<vmem>>, %arg5: memref<1x32xf32, #tpu.memory_space<vmem>>, %arg6: memref<1x32x256xf32, #tpu.memory_space<vmem>>) attributes {dimension_semantics = [#tpu.dimension_semantics<parallel>], iteration_bounds = array<i64: 2>, scalar_prefetch = 0 : i64, scratch_operands = 0 : i64, tpu.core_type = #tpu.core_type<tc>, window_params = [{transform_indices = @transform_0, window_bounds = array<i64: 1, 32, 256>}, {pipeline_mode = #tpu.pipeline_mode<synchronous>, transform_indices = @transform_1, window_bounds = array<i64: 32, 8>}, {pipeline_mode = #tpu.pipeline_mode<synchronous>, transform_indices = @transform_2, window_bounds = array<i64: 1, 8>}, {pipeline_mode = #tpu.pipeline_mode<synchronous>, transform_indices = @transform_3, window_bounds = array<i64: 8, 32>}, {pipeline_mode = #tpu.pipeline_mode<synchronous>, transform_indices = @transform_4, window_bounds = array<i64: 1, 32>}, {transform_indices = @transform_5, window_bounds = array<i64: 1, 32, 256>}]} {
    %c0 = arith.constant 0 : index
    %c0_0 = arith.constant 0 : index
    %c0_1 = arith.constant 0 : index
    %0 = vector.load %arg1[%c0, %c0_0, %c0_1] : memref<1x32x256xf32, #tpu.memory_space<vmem>>, vector<1x32x256xf32>
    %cst = arith.constant dense<0.000000e+00> : vector<1x32xf32>
    %1 = vector.multi_reduction <add>, %0, %cst [2] : vector<1x32x256xf32> to vector<1x32xf32>
    %cst_2 = arith.constant 3.906250e-03 : f32
    %2 = vector.broadcast %cst_2 : f32 to vector<1x32xf32>
    %3 = arith.mulf %1, %2 : vector<1x32xf32>
    %c0_3 = arith.constant 0 : index
    %c0_4 = arith.constant 0 : index
    %4 = vector.load %arg2[%c0_3, %c0_4] : memref<32x8xf32, #tpu.memory_space<vmem>>, vector<32x8xf32>
    %cst_5 = arith.constant dense<0.000000e+00> : vector<1x8xf32>
    %5 = tpu.matmul %3, %4, %cst_5 {dimension_numbers = #tpu.dot_dimension_numbers<[1], [0], [0], [1], [0, 0, 1, 1], [], []>} : vector<1x32xf32>, vector<32x8xf32>, vector<1x8xf32> -> vector<1x8xf32>
    %c0_6 = arith.constant 0 : index
    %c0_7 = arith.constant 0 : index
    %6 = vector.load %arg3[%c0_6, %c0_7] : memref<1x8xf32, #tpu.memory_space<vmem>>, vector<1x8xf32>
    %7 = arith.addf %5, %6 : vector<1x8xf32>
    %cst_8 = arith.constant 0.000000e+00 : f32
    %8 = vector.broadcast %cst_8 : f32 to vector<1x8xf32>
    %9 = arith.maximumf %7, %8 : vector<1x8xf32>
    %c0_9 = arith.constant 0 : index
    %c0_10 = arith.constant 0 : index
    %10 = vector.load %arg4[%c0_9, %c0_10] : memref<8x32xf32, #tpu.memory_space<vmem>>, vector<8x32xf32>
    %cst_11 = arith.constant dense<0.000000e+00> : vector<1x32xf32>
    %11 = tpu.matmul %9, %10, %cst_11 {dimension_numbers = #tpu.dot_dimension_numbers<[1], [0], [0], [1], [0, 0, 1, 1], [], []>} : vector<1x8xf32>, vector<8x32xf32>, vector<1x32xf32> -> vector<1x32xf32>
    %c0_12 = arith.constant 0 : index
    %c0_13 = arith.constant 0 : index
    %12 = vector.load %arg5[%c0_12, %c0_13] : memref<1x32xf32, #tpu.memory_space<vmem>>, vector<1x32xf32>
    %13 = arith.addf %11, %12 : vector<1x32xf32>
    %cst_14 = arith.constant 2.000000e-01 : f32
    %14 = vector.broadcast %cst_14 : f32 to vector<1x32xf32>
    %15 = arith.mulf %14, %13 : vector<1x32xf32>
    %cst_15 = arith.constant 5.000000e-01 : f32
    %16 = vector.broadcast %cst_15 : f32 to vector<1x32xf32>
    %17 = arith.addf %15, %16 : vector<1x32xf32>
    %cst_16 = arith.constant 0.000000e+00 : f32
    %cst_17 = arith.constant 1.000000e+00 : f32
    %18 = vector.broadcast %cst_16 : f32 to vector<1x32xf32>
    %19 = arith.maximumf %18, %17 : vector<1x32xf32>
    %20 = vector.broadcast %cst_17 : f32 to vector<1x32xf32>
    %21 = arith.minimumf %20, %19 : vector<1x32xf32>
    %22 = vector.shape_cast %21 : vector<1x32xf32> to vector<1x32x1xf32>
    %c0_18 = arith.constant 0 : index
    %c0_19 = arith.constant 0 : index
    %c0_20 = arith.constant 0 : index
    %23 = vector.load %arg1[%c0_18, %c0_19, %c0_20] : memref<1x32x256xf32, #tpu.memory_space<vmem>>, vector<1x32x256xf32>
    %24 = vector.broadcast %22 : vector<1x32x1xf32> to vector<1x32x256xf32>
    %25 = arith.mulf %24, %23 : vector<1x32x256xf32>
    %c0_21 = arith.constant 0 : index
    %c0_22 = arith.constant 0 : index
    %c0_23 = arith.constant 0 : index
    %26 = vector.load %arg6[%c0_21, %c0_22, %c0_23] : memref<1x32x256xf32, #tpu.memory_space<vmem>>, vector<1x32x256xf32>
    tpu.vector_store %arg6[%c0_21, %c0_22, %c0_23], %25 {strides = array<i32>} : memref<1x32x256xf32, #tpu.memory_space<vmem>>, vector<1x32x256xf32>,
    return
  }
  func.func @transform_0(%arg0: i32) -> (i32, i32, i32) {
    %c0_i32 = arith.constant 0 : i32
    %c0_i32_0 = arith.constant 0 : i32
    %c0_i32_1 = arith.constant 0 : i32
    return %arg0, %c0_i32, %c0_i32_0 : i32, i32, i32
  }
  func.func @transform_1(%arg0: i32) -> (i32, i32) {
    %c0_i32 = arith.constant 0 : i32
    %c0_i32_0 = arith.constant 0 : i32
    %c0_i32_1 = arith.constant 0 : i32
    return %c0_i32, %c0_i32_0 : i32, i32
  }
  func.func @transform_2(%arg0: i32) -> (i32, i32) {
    %c0_i32 = arith.constant 0 : i32
    %c0_i32_0 = arith.constant 0 : i32
    %c0_i32_1 = arith.constant 0 : i32
    return %c0_i32, %c0_i32_0 : i32, i32
  }
  func.func @transform_3(%arg0: i32) -> (i32, i32) {
    %c0_i32 = arith.constant 0 : i32
    %c0_i32_0 = arith.constant 0 : i32
    %c0_i32_1 = arith.constant 0 : i32
    return %c0_i32, %c0_i32_0 : i32, i32
  }
  func.func @transform_4(%arg0: i32) -> (i32, i32) {
    %c0_i32 = arith.constant 0 : i32
    %c0_i32_0 = arith.constant 0 : i32
    %c0_i32_1 = arith.constant 0 : i32
    return %c0_i32, %c0_i32_0 : i32, i32
  }
  func.func @transform_5(%arg0: i32) -> (i32, i32, i32) {
    %c0_i32 = arith.constant 0 : i32
    %c0_i32_0 = arith.constant 0 : i32
    %c0_i32_1 = arith.constant 0 : i32
    return %arg0, %c0_i32, %c0_i32_0 : i32, i32, i32
  }
}

</mosaic_0001>

<bundles_post_ra>
// kernel: tpu_custom_call.1
= control target key start
LH: loop header
LB: loop body
LE: loop exit
PB: predicated region body
PF: predicated region fallthrough
CT: control target
= control target key end

     0   :  { %10 = vsyncpa [#allocation3], 0  ;;  %s866_s0 = inlined_call_operand.hbm [shape: f32[2,32,256], index: 0, kind: input, shape index: {}]   ;;  %s867_s1 = inlined_call_operand.vmem [shape: f32[32,8], index: 1, kind: input, shape index: {}]   ;;  %s868_s2 = inlined_call_operand.vmem [shape: f32[1,8], index: 2, kind: input, shape index: {}]   ;;  %s869_s3 = inlined_call_operand.vmem [shape: f32[8,32], index: 3, kind: input, shape index: {}]   ;;  %s870_s4 = inlined_call_operand.vmem [shape: f32[1,32], index: 4, kind: input, shape index: {}]   ;;  %s871_s5 = inlined_call_operand.hbm [shape: f32[2,32,256], index: 5, kind: output, shape index: {}]  }
   0x1   :  { %12 = vsyncpa [#allocation3 + $0x1], 0 }
   0x2   :  { %13 = vsyncpa [#allocation4], 0 }
   0x3   :  { %15 = vsyncpa [#allocation4 + $0x1], 0  ;;  %s682_s18 = smov 0   ;;  %s684_s19 = smov 0  }
   0x4   :  { %s686_s20 = smov 0   ;;  %s688_s21 = smov 0  }
   0x5 LB: > { %s703_s22 = sadd.s32 4294967295, %s646_s21   ;;  %s477_s23 = sadd.s32 4294967294, %s646_s21   ;;  %s646_s21 = sphi %s688_s21, %s881_s21   ;;  %s642_s20 = sphi %s686_s20, %s880_s20   ;;  %s638_s19 = sphi %s684_s19, %s879_s19   ;;  %s634_s18 = sphi %s682_s18, %s878_s18  }
   0x6   : > { %s707_s24 = sadd.s32 1, %s646_s21   ;;  %s28_s25 = sadd.s32 1, %s642_s20 }
   0x7   : > { %s25_s26 = ssub.s32 %s646_s21, %s707_s24  ;;  %p35_p0 = scmp.ne.s32.totalorder %s642_s20, %s638_s19 }
   0x8   : > { %p26_p1 = scmp.eq.s32.totalorder %s25_s26, 0  ;;  %p36_p2 = scmp.eq.s32.totalorder %s646_s21, 0 }
   0x9   : > { %p41_p3 = scmp.ne.s32.totalorder %s638_s19, %s634_s18  ;;  %p42_p4 = scmp.eq.s32.totalorder %s703_s22, 0 }
   0xa   : > { %s719_s27 = scalar_select %p26_p1, %s642_s20, %s28_s25  }
   0xb   : > { %p721_p5 = por %p36_p2, %p35_p0  ;;  %p725_p6 = por %p42_p4, %p41_p3 }
   0xc   : > { %p149_p7 = scmp.eq.s32.totalorder %s703_s22, 1  ;;  %p155_p8 = scmp.eq.s32.totalorder %s477_s23, 1 }
   0xd   : > { %p507_p10 = scmp.lt.s32.totalorder %s646_s21, 2  ;;  %s187_s7 = sand.u32 1, %s642_s20  }
   0xe   : > { %p732_p11 = por %p149_p7, %p35_p0  ;;  %p736_p12 = por %p155_p8, %p41_p3 }
   0xf   : > { %s493_s8 = sshll.u32 %s646_s21, 6  ;;  %s480_s9 = sshll.u32 %s187_s7, 6 }
  0x10   : > { %s196_s12 = scalar_lea.hbm %s866_s0, %s493_s8  ;;  %s191_s14 = scalar_lea.vmem [#allocation2], %s480_s9 }
  0x11   : > { %s197_s13 = sshll.u32 %s196_s12, 4  ;;  %s199_s15 = sshll.u32 %s191_s14, 4  ;;  %s198_s13 = int_to_ptr.hbm [resolvable:$true] %s197_s13  ;;  %s200_s15 = int_to_ptr.vmem [resolvable:$true] %s199_s15 }
  0x12   : > { %p747_p13 = pnand %p507_p10, %p721_p5  ;;  %p483_p0 = scmp.ge.s32.totalorder %s646_s21, 1 }
  0x13   : > { %p207_p1 = scmp.lt.s32.totalorder %s646_s21, 3  ;;  %s188_s17 = scalar_lea.sflag [#allocation3], %s187_s7 }
  0x14   : > { %s550_s23 = sshra.s32 %s198_s13, 4  ;;  %p554_p3 = pneg %p747_p13  ;;  %s551_s23 = int_to_ptr.hbm [resolvable:$true] %s550_s23 }
  0x15   : > { %s552_s25 = scalar_lea.hbm %s551_s23, 64  ;;  %s557_s28 = scalar_lea.hbm %s866_s0, 128 }
  0x16   : > { %p553_p2 = scmp.ne.s32.totalorder %s551_s23, %s552_s25  ;;  %p558_p5 = scmp.lt.s32.totalorder %s551_s23, %s866_s0 }
  0x17   : > { %p559_p8 = scmp.lt.s32.totalorder %s557_s28, %s552_s25 }
  0x18   : > { %p555_p4 = pnand %p554_p3, %p553_p2 }
  0x19   : > { %p560_p10 = por %p559_p8, %p558_p5 }
  0x1a   : > { %p556_p7 = pneg %p555_p4 }
  0x1c   : > { %p561_p9 = pnand %p560_p10, %p556_p7 }
  0x1e   : > { %564 = shalt.err (!%p561_p9)
}
  0x1f   : > { %s648_s7 = smov 256   ;;  %s649_s11 = smov 16  }
  0x20   : > { %502 = dma.hbm_to_vmem [thread:$0]  (!%p747_p13), %s198_s13, 1024, %s200_s15, %s188_s17, %s648_s7, %s648_s7, %s649_s11  }
  0x21   : > { %p208_p2 = pnand %p483_p0, %p207_p1 }
  0x22   : > { %s768_s12 = sand.u32 (!%p208_p2), 1, %s638_s19  }
  0x23   : > { %211 = sbr.rel (%p208_p2) target bundleno = 567 (0x237), region = 40  ;;  %s484_s14 = sshll.u32 (!%p208_p2), %s768_s12, 6 }
  0x24   : > { %s214_s23 = scalar_lea.sflag (!%p208_p2), [#allocation3], %s768_s12  ;;  %s217_s25 = scalar_lea.vmem (!%p208_p2), [#allocation2], %s484_s14 }
  0x28   : > { %625 = dma.done.wait (%p725_p6), %s214_s23, 1024  }
  0x29   : > { %627 = vsyncadd (%p725_p6), %s214_s23, 4294966272  ;;  %v778_v0 = vld [vmem:[%s217_s25] sm:$0xff]  ;;  %v780_v1 = vld [vmem:[%s217_s25 + $0x8] sm:$0xff]  ;;  %v278_v16 = vlaneseq  ;;  %vm283_vm0 = vcmask 130112   ;;  %vm287_vm1 = vcmask 195712   ;;  %vm291_vm2 = vcmask 261312  }
  0x2a   : > { %v782_v2 = vld [vmem:[%s217_s25 + $0x20] sm:$0xff]  ;;  %v253_v3 = vadd.f32 %v780_v1, %v778_v0  ;;  %v786_v4 = vld [vmem:[%s217_s25 + $0x28] sm:$0xff]  ;;  %v790_v6 = vld [vmem:[%s217_s25 + $0x10] sm:$0xff]  ;;  %vm293_vm3 = vcmask 261120   ;;  %vm319_vm4 = vcmask 64512   ;;  %s244_s29 = scalar_lea.vmem [#allocation5], %s484_s14 }
  0x2b   : > { %v259_v5 = vadd.f32 %v786_v4, %v782_v2  ;;  %v792_v7 = vld [vmem:[%s217_s25 + $0x18] sm:$0xff]  ;;  %v794_v8 = vld [vmem:[%s217_s25 + $0x30] sm:$0xff]  ;;  %v270_v14 = vld [vmem:[%s867_s1 + $0x8] sm:$0xff]  ;;  %v279_v19 = vand.u32 127, %v278_v16  ;;  %v349_v41 = vshrl.u32 %v278_v16, 7  ;;  %s494_s13 = sshll.u32 %s703_s22, 6 }
  0x2c   : > { %254 = vadd.xlane.f32.xlu0 %v253_v3  ;;  %v796_v9 = vld [vmem:[%s217_s25 + $0x38] sm:$0xff]  ;;  %v256_v10 = vadd.f32 %v792_v7, %v790_v6  ;;  %v271_v13 = vld [vmem:[%s867_s1 + $0x10] sm:$0xff]  ;;  %v269_v15 = vld [vmem:[%s867_s1] sm:$0xff]  ;;  %s400_s17 = scalar_lea.hbm %s871_s5, %s494_s13  ;;  %s401_s26 = sshll.u32 %s244_s29, 4  ;;  %s402_s26 = int_to_ptr.vmem [resolvable:$true] %s401_s26 }
  0x2d   : > { %260 = vadd.xlane.f32.xlu1 %v259_v5  ;;  %v262_v11 = vadd.f32 %v796_v9, %v794_v8  ;;  %v272_v12 = vld [vmem:[%s867_s1 + $0x18] sm:$0xff]  ;;  %v281_v21 = vadd.s32 4294967288, %v279_v19  ;;  %v285_v22 = vadd.s32 4294967280, %v279_v19  ;;  %v289_v25 = vadd.s32 4294967272, %v279_v19  ;;  %v317_v36 = vld [vmem:[%s869_s3] sm:$0xff]  ;;  %545 = vset.pattern.permute.xlu2 %v349_v41  ;;  %s403_s8 = sshll.u32 %s400_s17, 4  ;;  %s404_s8 = int_to_ptr.hbm [resolvable:$true] %s403_s8 }
  0x2e   : > { %308 = vmatpush.msra.mxu0 %v272_v12  ;;  %338 = vmatpush.msra.mxu1 %v317_v36  ;;  %v273_v37 = vld [vmem:[%s868_s2] sm:$0x1]  ;;  %v368_v42 = vadd.s32 24, %v349_v41  ;;  %v362_v43 = vadd.s32 16, %v349_v41  ;;  %v356_v52 = vadd.s32 8, %v349_v41  ;;  %s389_s22 = scalar_lea.sflag [#allocation4], %s768_s12 }
  0x2f   : > { %v318_v44 = vld [vmem:[%s870_s4] sm:$0x1]  ;;  %s594_s14 = sshra.s32 %s404_s8, 4  ;;  %s600_s7 = scalar_lea.hbm %s871_s5, 128  ;;  %s595_s14 = int_to_ptr.hbm [resolvable:$true] %s594_s14 }
  0x30   : > { %309 = vmatpush.msra.mxu0 %v271_v13  ;;  %548 = vset.pattern.permute.xlu1 %v368_v42  ;;  %s596_s28 = scalar_lea.hbm %s595_s14, 64  ;;  %p601_p0 = scmp.lt.s32.totalorder %s595_s14, %s871_s5 }
  0x31   : > { %547 = vset.pattern.permute.xlu0 %v362_v43  ;;  %p597_p6 = scmp.ne.s32.totalorder %s595_s14, %s596_s28  ;;  %p602_p1 = scmp.lt.s32.totalorder %s600_s7, %s596_s28 }
  0x32   : > { %310 = vmatpush.msra.mxu0 %v270_v14 }
  0x33   : > { %p598_p9 = pnand %p597_p6, %p732_p11  ;;  %p603_p3 = por %p602_p1, %p601_p0 }
  0x34   : > { %257 = vadd.xlane.f32.xlu0 %v256_v10  ;;  %311 = vmatpush.msra.mxu0 %v269_v15 }
  0x35   : > { %263 = vadd.xlane.f32.xlu1 %v262_v11  ;;  %p599_p13 = pneg %p598_p9 }
  0x37   : > { %p604_p4 = pnand %p603_p3, %p599_p13 }
  0x9f   : > { %v255_v17 = vpop.xlane.xlu0 %254 }
  0xa0   : > { %v261_v18 = vpop.xlane.xlu1 %260  ;;  %v265_v20 = vmul.f32 0.00390625, %v255_v17 }
  0xa1   : > { %v267_v23 = vmul.f32 0.00390625, %v261_v18 }
  0xa2   : > { %v280_v29 = vperm.slane %v265_v20, %v279_v19 }
  0xa3   : > { %v286_v31 = vperm.slane %v267_v23, %v285_v22 }
  0xa7   : > { %v258_v24 = vpop.xlane.xlu0 %257 }
  0xa8   : > { %v266_v26 = vmul.f32 0.00390625, %v258_v24  ;;  %v264_v27 = vpop.xlane.xlu1 %263 }
  0xa9   : > { %v268_v28 = vmul.f32 0.00390625, %v264_v27 }
  0xaa   : > { %v282_v30 = vperm.slane %v266_v26, %v281_v21 }
  0xab   : > { %v290_v32 = vperm.slane %v268_v28, %v289_v25 }
  0xac   : > { %v284_v33 = vsel %vm283_vm0, %v282_v30, %v280_v29 }
  0xad   : > { %v288_v34 = vsel %vm287_vm1, %v286_v31, %v284_v33 }
  0xae   : > { %v292_v35 = vsel %vm291_vm2, %v290_v32, %v288_v34 }
  0xaf   : > { %486 = vmatmul.msk.f32.vlgmr.msra.gmra.mxu0 %vm293_vm3, %v292_v35 }
 0x12c   : > { %v313_v38 = vpop.f32.mrf.mxu0 }
 0x12d   : > { %v314_v39 = vadd.f32 %v313_v38, %v273_v37 }
 0x12f   : > { %v316_v40 = vmax.f32 %v314_v39, 0.0 }
 0x131   : > { %487 = vmatmul.msk.f32.vlgmr.msra.gmra.mxu1 %vm319_vm4, %v316_v40 }
 0x1ae   : > { %v340_v45 = vpop.f32.mrf.mxu1 }
 0x1af   : > { %v341_v46 = vadd.f32 %v340_v45, %v318_v44 }
 0x1b1   : > { %v343_v47 = vmul.f32 0.2, %v341_v46 }
 0x1b3   : > { %v344_v48 = vadd.f32 0.5, %v343_v47 }
 0x1b5   : > { %v345_v49 = vmax.f32 %v344_v48, 0.0 }
 0x1b7   : > { %v346_v50 = vmin.f32 %v345_v49, 1.0 }
 0x1b9   : > { %v347_v51 = vperm.slane %v346_v50, 0 }
 0x1bb   : > { %370 = vperm.xlu1 %548, %v347_v51   ;;  %364 = vperm.xlu0 %547, %v347_v51  }
 0x1bc   : > { %352 = vperm.xlu2 %545, %v347_v51  }
 0x1c3   : > { %549 = vset.pattern.permute.xlu0 %v368_v42 }
 0x1c4   : > { %546 = vset.pattern.permute.xlu2 %v356_v52 }
 0x1cc   : > { %358 = vperm.xlu2 %546, %v347_v51  }
 0x216   : > { %v353_v53 = vpop.permute.xlu2 %352 }
 0x217   : > { %v372_v54 = vmul.f32 %v353_v53, %v778_v0  ;;  %v373_v55 = vmul.f32 %v353_v53, %v780_v1 }
 0x219   : > { %380 = vst [vmem:[%s244_s29] sm:$0xff] %v372_v54 }
 0x21a   : > { %381 = vst [vmem:[%s244_s29 + $0x8] sm:$0xff] %v373_v55 }
 0x226   : > { %v359_v56 = vpop.permute.xlu2 %358 }
 0x227   : > { %v374_v57 = vmul.f32 %v359_v56, %v790_v6  ;;  %v375_v58 = vmul.f32 %v359_v56, %v792_v7 }
 0x229   : > { %382 = vst [vmem:[%s244_s29 + $0x10] sm:$0xff] %v374_v57 }
 0x22a   : > { %383 = vst [vmem:[%s244_s29 + $0x18] sm:$0xff] %v375_v58 }
 0x22d   : > { %v371_v59 = vpop.permute.xlu1 %370  ;;  %v365_v60 = vpop.permute.xlu0 %364 }
 0x22e   : > { %v378_v61 = vmul.f32 %v371_v59, %v794_v8  ;;  %v379_v62 = vmul.f32 %v371_v59, %v796_v9  ;;  %v376_v63 = vmul.f32 %v365_v60, %v782_v2  ;;  %v377_v0 = vmul.f32 %v365_v60, %v786_v4 }
 0x230   : > { %386 = vst [vmem:[%s244_s29 + $0x30] sm:$0xff] %v378_v61 }
 0x231   : > { %387 = vst [vmem:[%s244_s29 + $0x38] sm:$0xff] %v379_v62 }
 0x232   : > { %384 = vst [vmem:[%s244_s29 + $0x20] sm:$0xff] %v376_v63 }
 0x233   : > { %385 = vst [vmem:[%s244_s29 + $0x28] sm:$0xff] %v377_v0 }
 0x234   : > { %607 = shalt.err (!%p604_p4)
}
 0x235   : > { %s650_s12 = smov 256   ;;  %s651_s25 = smov 16  }
 0x236   : > { %497 = dma.vmem_to_hbm [thread:$0]  (%p732_p11), %s402_s26, 1024, %s404_s8, %s389_s22, %s650_s12, %s650_s12, %s651_s25  }
 0x237 PF: > { %s418_s29 = sand.u32 1, %s634_s18   ;;  %p877_p7 = scmp.ge.s32.totalorder %s646_s21, 2 }
 0x238   : > { %s419_s13 = scalar_lea.sflag [#allocation4], %s418_s29 }
 0x239   : > { %p504_p5 = pnand %p877_p7, %p736_p12 }
 0x23b   : > { %p505_p8 = pneg %p504_p5 }
 0x23d   : > { %629 = dma.done.wait (%p505_p8), %s419_s13, 1024  }
 0x23e   : > { %631 = vsyncadd (%p505_p8), %s419_s13, 4294966272  ;;  %p18_p10 = scmp.ge.s32.totalorder %s707_s24, 4   ;;  %s878_s18 = smov %s638_s19 }
 0x23f   : > { %s879_s19 = smov %s642_s20  ;;  %s880_s20 = smov %s719_s27 }
 0x240   : > { %s881_s21 = smov %s707_s24  ;;  %20 = sbr.rel (!%p18_p10) target bundleno = 5 (0x5), region = 85 }
 0x245   :  { %425 = vsyncpa [#allocation3], 1 }
 0x246   :  { %427 = vsyncpa [#allocation3 + $0x1], 1 }
 0x247   :  { %428 = vsyncpa [#allocation4], 1 }
 0x248   :  { %430 = vsyncpa [#allocation4 + $0x1], 1 }

</bundles_post_ra>
